<compile_context>
chip_gen: v6e
topology: v6e:2x2x1
jax: 0.10.0
libtpu: 0.0.40
codegen_flags: <defaults>
</compile_context>

<pallas_src>
import functools

import numpy as np
import jax
import jax.numpy as jnp
from jax.experimental import pallas as pl
from jax.experimental.pallas import tpu as pltpu

EPS = 1e-5
_VMEM_LIMIT = 32 * 1024 * 1024  # fits scoped VMEM on v5e/v6e and v7x's 64 MiB physical


# --------------------------------------------------------------------- matmuls

def _mm_bias_kernel(x_ref, w_ref, b_ref, o_ref):
    # o = x @ w + b
    o_ref[...] = (jnp.dot(x_ref[...], w_ref[...],
                          preferred_element_type=jnp.float32) + b_ref[...])


def matmul_bias(x, w, bias, tm=256):
    """Row-tiled y = x @ w + bias (f32). Used for the small classifier heads."""
    N, K = x.shape
    M = w.shape[1]
    if N % tm != 0:
        tm = N
    return pl.pallas_call(
        _mm_bias_kernel,
        out_shape=jax.ShapeDtypeStruct((N, M), jnp.float32),
        grid=(N // tm,),
        in_specs=[pl.BlockSpec((tm, K), lambda i: (i, 0)),
                  pl.BlockSpec((K, M), lambda i: (0, 0)),
                  pl.BlockSpec((1, M), lambda i: (0, 0))],
        out_specs=pl.BlockSpec((tm, M), lambda i: (i, 0)),
        compiler_params=pltpu.CompilerParams(dimension_semantics=("parallel",)),
    )(x.astype(jnp.float32), w.astype(jnp.float32),
      bias.reshape(1, M).astype(jnp.float32))


def _mm_bias_stats_kernel(x_ref, w_ref, b_ref, o_ref, s_ref):
    # bf16 operands -> MXU, f32 accumulation. Also emit per-tile sum / sum-of-
    # squares so the BatchNorm batch statistics need no extra HBM pass over lf.
    y = jnp.dot(x_ref[...], w_ref[...], preferred_element_type=jnp.float32) + b_ref[...]
    o_ref[...] = y
    s_ref[0, 0:1, :] = jnp.sum(y, axis=0, keepdims=True)
    s_ref[0, 1:2, :] = jnp.sum(y * y, axis=0, keepdims=True)


def conv1x1_bias_stats(x_bf16, w_bf16, bias, tm=256):
    """Tiled 1x1 conv as (N, K) @ (K, M) + bias, plus per-tile BN partial stats."""
    N, K = x_bf16.shape
    M = w_bf16.shape[1]
    if N % tm != 0:
        tm = N
    G = N // tm
    return pl.pallas_call(
        _mm_bias_stats_kernel,
        out_shape=(jax.ShapeDtypeStruct((N, M), jnp.float32),
                   jax.ShapeDtypeStruct((G, 2, M), jnp.float32)),
        grid=(G,),
        in_specs=[pl.BlockSpec((tm, K), lambda i: (i, 0)),
                  pl.BlockSpec((K, M), lambda i: (0, 0)),
                  pl.BlockSpec((1, M), lambda i: (0, 0))],
        out_specs=[pl.BlockSpec((tm, M), lambda i: (i, 0)),
                   pl.BlockSpec((1, 2, M), lambda i: (i, 0, 0))],
        compiler_params=pltpu.CompilerParams(
            dimension_semantics=("parallel",),
            vmem_limit_bytes=_VMEM_LIMIT),
    )(x_bf16, w_bf16, bias.reshape(1, M).astype(jnp.float32))


# ------------------------------------------------------- 3x3 spatial attention

def _conv3x3_masks(H, W, F):
    """Validity mask per tap for the flattened (F*H*W) lane-major spatial map."""
    HW = H * W
    q = np.arange(F * HW)
    p = q % HW
    y = p // W
    x = p % W
    m = np.zeros((9, F * HW), np.float32)
    for k in range(9):
        oy, ox = k // 3 - 1, k % 3 - 1
        m[k] = ((y + oy >= 0) & (y + oy < H) &
                (x + ox >= 0) & (x + ox < W)).astype(np.float32)
    return jnp.asarray(m)


def _conv3x3_kernel(x_ref, scale_ref, shift_ref, w_ref, m_ref, b_ref, o_ref, tp_ref,
                    *, apply_bn_relu, pad, H, W, F):
    # x_ref: (F, HW, C)  scale/shift: (1, C)  w_ref: (9, C)  m_ref: (9, F*HW)
    # b_ref: (1,1) SMEM  o_ref: (1, 1, F*HW)  tp_ref: (9, F*HW + 2*pad) VMEM scratch
    HW = H * W
    FHW = F * HW
    C = x_ref.shape[-1]
    lf = x_ref[...].reshape(FHW, C)
    if apply_bn_relu:
        # fused BatchNorm (pre-folded scale/shift) + ReLU
        lf = jnp.maximum(lf * scale_ref[...] + shift_ref[...], 0.0)
    # All 9 taps' channel contraction as a single MXU matmul (NT form):
    #   taps[k, q] = sum_c w[k, c] * lf[q, c]        -> (9, F*HW) lane-major maps.
    taps = jax.lax.dot_general(w_ref[...], lf, (((1,), (1,)), ((), ())),
                               preferred_element_type=jnp.float32)
    tp_ref[...] = jnp.zeros_like(tp_ref)          # zero the lane halo
    tp_ref[:, pad:pad + FHW] = taps
    acc = jnp.zeros((1, FHW), jnp.float32)
    for k in range(9):
        off = (k // 3 - 1) * W + (k % 3 - 1)      # flattened spatial offset of tap k
        shifted = tp_ref[k:k + 1, pad + off:pad + off + FHW]
        acc = acc + shifted * m_ref[k:k + 1, :]   # mask kills row/col wrap-around
    o_ref[0] = acc + b_ref[0, 0]


def conv3x3_attn(x_nhwc, scale, shift, w9, bias_scalar, masks, *, frames_per_step,
                 H, W, apply_bn_relu):
    """Conv2d(C -> 1, 3x3, padding=1) with optional fused BN+ReLU on the input.

    Input is (BT, H*W, C) channels-last; output is (BT, H*W) lane-dense."""
    BT, HW, C = x_nhwc.shape
    F = frames_per_step
    G = BT // F
    FHW = F * HW
    PAD = 128
    kern = functools.partial(_conv3x3_kernel, apply_bn_relu=apply_bn_relu,
                             pad=PAD, H=H, W=W, F=F)
    out = pl.pallas_call(
        kern,
        out_shape=jax.ShapeDtypeStruct((G, 1, FHW), jnp.float32),
        grid=(G,),
        in_specs=[pl.BlockSpec((F, HW, C), lambda i: (i, 0, 0)),
                  pl.BlockSpec((1, C), lambda i: (0, 0)),
                  pl.BlockSpec((1, C), lambda i: (0, 0)),
                  pl.BlockSpec((9, C), lambda i: (0, 0)),
                  pl.BlockSpec((9, FHW), lambda i: (0, 0)),
                  pl.BlockSpec((1, 1), lambda i: (0, 0),
                               memory_space=pltpu.MemorySpace.SMEM)],
        out_specs=pl.BlockSpec((1, 1, FHW), lambda i: (i, 0, 0)),
        scratch_shapes=[pltpu.VMEM((9, FHW + 2 * PAD), jnp.float32)],
        compiler_params=pltpu.CompilerParams(
            dimension_semantics=("parallel",),
            vmem_limit_bytes=_VMEM_LIMIT),
    )(x_nhwc, scale, shift, w9, masks, bias_scalar.reshape(1, 1))
    return out.reshape(BT, HW)


# ------------------------------------------------------ temporal 1-D attention

def _tconv_shift_mats(b, t):
    """(3, b*t, b*t) row-shift matrices implementing the +/-1 temporal taps with
    zero padding at each clip boundary (so the shift rides the MXU, no roll)."""
    bt = b * t
    s = np.zeros((3, bt, bt), np.float32)
    for k in range(3):
        off = k - 1
        for r in range(bt):
            tau = r % t
            if 0 <= tau + off < t:
                s[k, r, r + off] = 1.0
    return jnp.asarray(s)


def _tconv_kernel(a_ref, w_ref, s_ref, b_ref, o_ref):
    # a_ref: (b*t, HW)  w_ref: (3, HW, HW) [k, in, out]  s_ref: (3, bt, bt)
    # b_ref: (1, HW)    o_ref: (b*t, HW)
    A = a_ref[...]
    out = jnp.zeros(o_ref.shape, jnp.float32) + b_ref[...]
    for k in range(3):
        a_sh = jnp.dot(s_ref[k], A, preferred_element_type=jnp.float32)
        out = out + jnp.dot(a_sh, w_ref[k], preferred_element_type=jnp.float32)
    o_ref[...] = out


def conv1d_time(a_bt_hw, w_kio, bias_row, shift_mats):
    """Conv1d(HW, HW, kernel=3, padding=1) over time; b*t folded into the MXU M
    dimension, HW stays the lane dimension (no transposes). Tiny op -> 1 block."""
    BT, HW = a_bt_hw.shape
    return pl.pallas_call(
        _tconv_kernel,
        out_shape=jax.ShapeDtypeStruct((BT, HW), jnp.float32),
        grid=(1,),
        in_specs=[pl.BlockSpec((BT, HW), lambda i: (0, 0)),
                  pl.BlockSpec((3, HW, HW), lambda i: (0, 0, 0)),
                  pl.BlockSpec((3, BT, BT), lambda i: (0, 0, 0)),
                  pl.BlockSpec((1, HW), lambda i: (0, 0))],
        out_specs=pl.BlockSpec((BT, HW), lambda i: (0, 0)),
    )(a_bt_hw, w_kio, shift_mats, bias_row)


# ---------------------------------------------- fused sigmoid + GAP + temporal mean

def _attn_gap_kernel(x_ref, a_ref, o_ref, acc_ref, *, apply_relu, inv_norm):
    # x_ref: (1, 1, HW, C)  a_ref: (1, 1, 1, HW)  o_ref: (1, 1, C)  acc_ref: (1, C)
    @pl.when(pl.program_id(1) == 0)
    def _():
        acc_ref[...] = jnp.zeros_like(acc_ref)

    att = jax.nn.sigmoid(a_ref[0, 0])                         # (1, HW) -> EUP
    acc_ref[...] += jnp.dot(att, x_ref[0, 0],                 # (1,HW)@(HW,C) on MXU
                            preferred_element_type=jnp.float32)

    @pl.when(pl.program_id(1) == pl.num_programs(1) - 1)
    def _():
        res = acc_ref[...] * inv_norm                         # one scale by 1/(HW*t)
        if apply_relu:
            res = jnp.maximum(res, 0.0)
        o_ref[0] = res


def attn_gap(x_bthwc, a_logits, apply_relu):
    b, t, HW, C = x_bthwc.shape
    kern = functools.partial(_attn_gap_kernel, apply_relu=apply_relu,
                             inv_norm=1.0 / float(HW * t))
    out = pl.pallas_call(
        kern,
        out_shape=jax.ShapeDtypeStruct((b, 1, C), jnp.float32),
        grid=(b, t),
        in_specs=[pl.BlockSpec((1, 1, HW, C), lambda i, j: (i, j, 0, 0)),
                  pl.BlockSpec((1, 1, 1, HW), lambda i, j: (i, j, 0, 0))],
        out_specs=pl.BlockSpec((1, 1, C), lambda i, j: (i, 0, 0)),
        scratch_shapes=[pltpu.VMEM((1, C), jnp.float32)],
        compiler_params=pltpu.CompilerParams(
            dimension_semantics=("parallel", "arbitrary")),
    )(x_bthwc, a_logits)
    return out[:, 0, :]


# -------------------------------------------------------------------- forward

def video_baseline_forward(x5, p):
    """x5: backbone feature maps, shape (b, t, C, H, W) (NCHW per frame)."""
    b, t, C, H, W = x5.shape
    HW = H * W
    BT = b * t
    N = BT * HW

    # Single NCHW -> channels-last transpose; this buffer feeds every kernel
    # (as (BT, HW, C), (N, C) and (b, t, HW, C) reshapes -- all free).
    gf = jnp.transpose(x5.reshape(BT, C, HW), (0, 2, 1)).astype(jnp.float32)
    gf_flat = gf.reshape(N, C)
    gf_hw = gf.reshape(b, t, HW, C)
    gf_bf16 = gf_flat.astype(jnp.bfloat16)     # bf16 MXU operands for the 1x1 conv

    masks9 = _conv3x3_masks(H, W, t)           # (9, t*HW)
    smats = _tconv_shift_mats(b, t)            # (3, BT, BT)
    ones_c = jnp.ones((1, C), jnp.float32)
    zeros_c = jnp.zeros((1, C), jnp.float32)

    def bce_attr_module(mp):
        # 1x1 conv (C->C) with fused BatchNorm batch-statistics side outputs.
        lf, stats = conv1x1_bias_stats(gf_bf16, mp['w_conv'].astype(jnp.bfloat16),
                                       mp['b_conv'])
        s = jnp.sum(stats, axis=0)                           # (2, C)
        mean = s[0] / N
        var = jnp.maximum(s[1] / N - mean * mean, 0.0)
        scale = (1.0 / jnp.sqrt(var + EPS)).reshape(1, C)
        shift = (-mean).reshape(1, C) * scale
        # spatial attention: 3x3 conv C->1 with BN+ReLU fused in, MXU taps,
        # lane-dense output, borders handled in-kernel (no host jnp.pad).
        a_s = conv3x3_attn(lf.reshape(BT, HW, C), scale, shift, mp['w_s'], mp['b_s'],
                           masks9, frames_per_step=t, H=H, W=W, apply_bn_relu=True)
        # temporal attention: Conv1d(HW, HW, 3, padding=1) over t.
        a_t = conv1d_time(a_s, jnp.swapaxes(mp['w_t'], 1, 2),
                          mp['b_t'].reshape(1, HW), smats)   # (BT, HW)
        a_logits = a_t.reshape(b, t, 1, HW)
        # fused sigmoid + attention-weighted GAP + temporal mean + ReLU
        gfeat = attn_gap(gf_hw, a_logits, apply_relu=True)   # (b, C)
        return matmul_bias(gfeat, mp['w_cls'], mp['b_cls'])

    y1 = bce_attr_module(p['attr1'])
    y2 = bce_attr_module(p['attr2'])

    # main branch: 3x3 attention conv directly on backbone features (no BN/ReLU)
    a_main = conv3x3_attn(gf, ones_c, zeros_c, p['w_att'], p['b_att'], masks9,
                          frames_per_step=t, H=H, W=W, apply_bn_relu=False)
    gpool = attn_gap(gf_hw, a_main.reshape(b, t, 1, HW), apply_relu=False)

    # TODO(synk): BatchNorm1d bottleneck (training batch stats over b samples) in glue.
    mean = jnp.mean(gpool, axis=0)
    var = jnp.var(gpool, axis=0)
    feat = (gpool - mean) / jnp.sqrt(var + EPS)
    cls_score = matmul_bias(feat, p['w_cls_main'],
                            jnp.zeros((p['w_cls_main'].shape[1],), jnp.float32))
    return cls_score, gpool, [y1, y2]


# ------------------------------------------------------------------- reference

def reference_forward(x5, p):
    b, t, C, H, W = x5.shape
    HW = H * W
    gf = jnp.transpose(x5.reshape(b * t, C, H, W), (0, 2, 3, 1)).astype(jnp.float32)
    gf_flat = gf.reshape(b * t * HW, C)
    gf_hw = gf.reshape(b, t, HW, C)

    def conv3x3_ref(x_img, w9, bias):
        xp = jnp.pad(x_img, ((0, 0), (1, 1), (1, 1), (0, 0)))
        acc = jnp.zeros((x_img.shape[0], H, W), jnp.float32)
        for dy in range(3):
            for dx in range(3):
                acc = acc + jnp.einsum('nhwc,c->nhw',
                                       xp[:, dy:dy + H, dx:dx + W, :], w9[3 * dy + dx])
        return acc + bias

    def bce_module(mp):
        # operands rounded to bf16 to mirror the kernel's MXU operand dtype
        xb = gf_flat.astype(jnp.bfloat16).astype(jnp.float32)
        wb = mp['w_conv'].astype(jnp.bfloat16).astype(jnp.float32)
        lf = xb @ wb + mp['b_conv']
        mean, var = jnp.mean(lf, 0), jnp.var(lf, 0)
        lf = jnp.maximum((lf - mean) / jnp.sqrt(var + EPS), 0.0)
        a = conv3x3_ref(lf.reshape(b * t, H, W, C), mp['w_s'], mp['b_s'])
        a = jnp.transpose(a.reshape(b, t, HW), (0, 2, 1))            # (b, HW, t)
        ap = jnp.pad(a, ((0, 0), (0, 0), (1, 1)))
        out = jnp.zeros((b, HW, t), jnp.float32)
        for k in range(3):
            out = out + jnp.einsum('oi,bit->bot', mp['w_t'][k], ap[:, :, k:k + t])
        out = out + mp['b_t'][None, :, :]
        a = jax.nn.sigmoid(jnp.transpose(out, (0, 2, 1)))            # (b, t, HW)
        gfeat = jnp.mean(a[..., None] * gf_hw, axis=2)               # (b, t, C)
        gfeat = jnp.maximum(jnp.mean(gfeat, axis=1), 0.0)
        return gfeat @ mp['w_cls'] + mp['b_cls']

    y1, y2 = bce_module(p['attr1']), bce_module(p['attr2'])
    a = jax.nn.sigmoid(conv3x3_ref(gf, p['w_att'], p['b_att']).reshape(b, t, HW))
    gpool = jnp.mean(jnp.mean(a[..., None] * gf_hw, axis=2), axis=1)
    mean, var = jnp.mean(gpool, 0), jnp.var(gpool, 0)
    feat = (gpool - mean) / jnp.sqrt(var + EPS)
    return feat @ p['w_cls_main'], gpool, [y1, y2]


# ---------------------------------------------------------------------- params

def init_params(key, C, HW, attr_lens, num_classes):
    keys = iter(jax.random.split(key, 16))

    def nrm(shape, std):
        return (std * jax.random.normal(next(keys), shape)).astype(jnp.float32)

    def attr_params(n_out):
        return dict(
            w_conv=nrm((C, C), (2.0 / C) ** 0.5),                  # Conv2d 1x1, kaiming fan_in
            b_conv=jnp.zeros((C,), jnp.float32),
            w_s=nrm((9, C), (2.0 / (9 * C)) ** 0.5),               # Conv2d 3x3 -> 1
            b_s=jnp.zeros((), jnp.float32),
            w_t=nrm((3, HW, HW), (2.0 / (3 * HW)) ** 0.5),         # Conv1d(HW, HW, 3) [k,out,in]
            b_t=jnp.zeros((HW, 1), jnp.float32),
            w_cls=nrm((C, n_out), 0.001),                          # classifier std=0.001
            b_cls=jnp.zeros((n_out,), jnp.float32),
        )

    return dict(
        attr1=attr_params(sum(attr_lens[0])),
        attr2=attr_params(sum(attr_lens[1])),
        w_att=nrm((9, C), (2.0 / (9 * C)) ** 0.5),                 # attention_conv 3x3 -> 1
        b_att=jnp.zeros((), jnp.float32),
        w_cls_main=nrm((C, num_classes), 0.001),                   # bnneck classifier, no bias
    )


# ------------------------------------------------------------------------ main

if __name__ == "__main__":
    b, t, C, H, W = 2, 4, 64, 16, 8          # H*W must be 128 (BCE module out_planes=16*8)
    attr_lens = [[2, 3], [4, 5]]
    num_classes = 10

    key = jax.random.PRNGKey(0)
    kx, kp = jax.random.split(key)
    x5 = jax.random.normal(kx, (b, t, C, H, W), dtype=jnp.float32)
    params = init_params(kp, C, H * W, attr_lens, num_classes)

    cls_score, global_feat, attr_ys = jax.block_until_ready(
        video_baseline_forward(x5, params))

    ref_cls, ref_gf, ref_ys = reference_forward(x5, params)
    np.testing.assert_allclose(np.asarray(cls_score), np.asarray(ref_cls),
                               rtol=5e-4, atol=5e-5)
    np.testing.assert_allclose(np.asarray(global_feat), np.asarray(ref_gf),
                               rtol=5e-4, atol=5e-5)
    for y, ry in zip(attr_ys, ref_ys):
        np.testing.assert_allclose(np.asarray(y), np.asarray(ry),
                                   rtol=5e-4, atol=5e-5)

    print("KERNEL_OK")
</pallas_src>

<mosaic_0001>
module attributes {stable_mosaic.version = 11 : i64} {
  func.func @_mm_bias_stats_kernel(%arg0: i32, %arg1: memref<256x64xbf16, #tpu.memory_space<vmem>>, %arg2: memref<64x64xbf16, #tpu.memory_space<vmem>>, %arg3: memref<1x64xf32, #tpu.memory_space<vmem>>, %arg4: memref<256x64xf32, #tpu.memory_space<vmem>>, %arg5: memref<1x2x64xf32, #tpu.memory_space<vmem>>) attributes {dimension_semantics = [#tpu.dimension_semantics<parallel>], iteration_bounds = array<i64: 4>, scalar_prefetch = 0 : i64, scratch_operands = 0 : i64, tpu.core_type = #tpu.core_type<tc>, window_params = [{transform_indices = @transform_0, window_bounds = array<i64: 256, 64>}, {pipeline_mode = #tpu.pipeline_mode<synchronous>, transform_indices = @transform_1, window_bounds = array<i64: 64, 64>}, {pipeline_mode = #tpu.pipeline_mode<synchronous>, transform_indices = @transform_2, window_bounds = array<i64: 1, 64>}, {transform_indices = @transform_3, window_bounds = array<i64: 256, 64>}, {transform_indices = @transform_4, window_bounds = array<i64: 1, 2, 64>}]} {
    %c0 = arith.constant 0 : index
    %c0_0 = arith.constant 0 : index
    %0 = vector.load %arg1[%c0, %c0_0] : memref<256x64xbf16, #tpu.memory_space<vmem>>, vector<256x64xbf16>
    %c0_1 = arith.constant 0 : index
    %c0_2 = arith.constant 0 : index
    %1 = vector.load %arg2[%c0_1, %c0_2] : memref<64x64xbf16, #tpu.memory_space<vmem>>, vector<64x64xbf16>
    %cst = arith.constant dense<0.000000e+00> : vector<256x64xf32>
    %2 = tpu.matmul %0, %1, %cst {dimension_numbers = #tpu.dot_dimension_numbers<[1], [0], [0], [1], [0, 0, 1, 1], [], []>} : vector<256x64xbf16>, vector<64x64xbf16>, vector<256x64xf32> -> vector<256x64xf32>
    %c0_3 = arith.constant 0 : index
    %c0_4 = arith.constant 0 : index
    %3 = vector.load %arg3[%c0_3, %c0_4] : memref<1x64xf32, #tpu.memory_space<vmem>>, vector<1x64xf32>
    %4 = vector.broadcast %3 : vector<1x64xf32> to vector<256x64xf32>
    %5 = arith.addf %2, %4 : vector<256x64xf32>
    %c0_5 = arith.constant 0 : index
    %c0_6 = arith.constant 0 : index
    %6 = vector.load %arg4[%c0_5, %c0_6] : memref<256x64xf32, #tpu.memory_space<vmem>>, vector<256x64xf32>
    tpu.vector_store %arg4[%c0_5, %c0_6], %5 {strides = array<i32>} : memref<256x64xf32, #tpu.memory_space<vmem>>, vector<256x64xf32>,
    %cst_7 = arith.constant dense<0.000000e+00> : vector<64xf32>
    %7 = vector.multi_reduction <add>, %5, %cst_7 [0] : vector<256x64xf32> to vector<64xf32>
    %8 = vector.shape_cast %7 : vector<64xf32> to vector<1x64xf32>
    %c0_8 = arith.constant 0 : index
    %c0_9 = arith.constant 0 : index
    %c0_10 = arith.constant 0 : index
    %9 = vector.load %arg5[%c0_8, %c0_9, %c0_10] : memref<1x2x64xf32, #tpu.memory_space<vmem>>, vector<1x1x64xf32>
    %10 = vector.shape_cast %9 : vector<1x1x64xf32> to vector<1x64xf32>
    %11 = vector.shape_cast %8 : vector<1x64xf32> to vector<1x1x64xf32>
    tpu.vector_store %arg5[%c0_8, %c0_9, %c0_10], %11 {strides = array<i32>} : memref<1x2x64xf32, #tpu.memory_space<vmem>>, vector<1x1x64xf32>,
    %12 = arith.mulf %5, %5 : vector<256x64xf32>
    %cst_11 = arith.constant dense<0.000000e+00> : vector<64xf32>
    %13 = vector.multi_reduction <add>, %12, %cst_11 [0] : vector<256x64xf32> to vector<64xf32>
    %14 = vector.shape_cast %13 : vector<64xf32> to vector<1x64xf32>
    %c0_12 = arith.constant 0 : index
    %c1 = arith.constant 1 : index
    %c0_13 = arith.constant 0 : index
    %15 = vector.load %arg5[%c0_12, %c1, %c0_13] : memref<1x2x64xf32, #tpu.memory_space<vmem>>, vector<1x1x64xf32>
    %16 = vector.shape_cast %15 : vector<1x1x64xf32> to vector<1x64xf32>
    %17 = vector.shape_cast %14 : vector<1x64xf32> to vector<1x1x64xf32>
    tpu.vector_store %arg5[%c0_12, %c1, %c0_13], %17 {strides = array<i32>} : memref<1x2x64xf32, #tpu.memory_space<vmem>>, vector<1x1x64xf32>,
    return
  }
  func.func @transform_0(%arg0: i32) -> (i32, i32) {
    %c0_i32 = arith.constant 0 : i32
    %c0_i32_0 = arith.constant 0 : i32
    return %arg0, %c0_i32 : i32, i32
  }
  func.func @transform_1(%arg0: i32) -> (i32, i32) {
    %c0_i32 = arith.constant 0 : i32
    %c0_i32_0 = arith.constant 0 : i32
    %c0_i32_1 = arith.constant 0 : i32
    return %c0_i32, %c0_i32_0 : i32, i32
  }
  func.func @transform_2(%arg0: i32) -> (i32, i32) {
    %c0_i32 = arith.constant 0 : i32
    %c0_i32_0 = arith.constant 0 : i32
    %c0_i32_1 = arith.constant 0 : i32
    return %c0_i32, %c0_i32_0 : i32, i32
  }
  func.func @transform_3(%arg0: i32) -> (i32, i32) {
    %c0_i32 = arith.constant 0 : i32
    %c0_i32_0 = arith.constant 0 : i32
    return %arg0, %c0_i32 : i32, i32
  }
  func.func @transform_4(%arg0: i32) -> (i32, i32, i32) {
    %c0_i32 = arith.constant 0 : i32
    %c0_i32_0 = arith.constant 0 : i32
    %c0_i32_1 = arith.constant 0 : i32
    return %arg0, %c0_i32, %c0_i32_0 : i32, i32, i32
  }
}

</mosaic_0001>

<bundles_post_ra>
// kernel: tpu_custom_call.1
= control target key start
LH: loop header
LB: loop body
LE: loop exit
PB: predicated region body
PF: predicated region fallthrough
CT: control target
= control target key end

     0   :  { %10 = vsyncpa [#allocation3], 0  ;;  %s1556_s0 = inlined_call_operand.vmem [shape: bf16[1024,64], index: 0, kind: input, shape index: {}]   ;;  %s1557_s1 = inlined_call_operand.vmem [shape: bf16[64,64], index: 1, kind: input, shape index: {}]   ;;  %s1558_s2 = inlined_call_operand.vmem [shape: f32[1,64], index: 2, kind: input, shape index: {}]   ;;  %s1559_s3 = inlined_call_operand.vmem [shape: f32[1024,64], index: 3, kind: output, shape index: {0}]   ;;  %s1560_s4 = inlined_call_operand.hbm [shape: f32[4,2,64], index: 4, kind: output, shape index: {1}]  }
   0x1   :  { %12 = vsyncpa [#allocation3 + $0x1], 0  ;;  %s1151_s15 = smov 0   ;;  %s1153_s16 = smov 0  }
   0x2   :  { %s1155_s17 = smov 0   ;;  %s1157_s18 = smov 0  }
   0x3 LB: > { %s885_s19 = sadd.s32 4294967295, %s1123_s18   ;;  %s886_s20 = sadd.s32 4294967294, %s1123_s18   ;;  %s1123_s18 = sphi %s1157_s18, %s1566_s18   ;;  %s1119_s17 = sphi %s1155_s17, %s1565_s17   ;;  %s1115_s16 = sphi %s1153_s16, %s1564_s16   ;;  %s1111_s15 = sphi %s1151_s15, %s1563_s15  }
   0x4   : > { %s1174_s21 = sadd.s32 1, %s1123_s18   ;;  %s119_s22 = sadd.s32 1, %s1119_s17 }
   0x5   : > { %s116_s23 = ssub.s32 %s1123_s18, %s1174_s21  ;;  %p129_p0 = scmp.ne.s32.totalorder %s1119_s17, %s1115_s16 }
   0x6   : > { %p117_p1 = scmp.eq.s32.totalorder %s116_s23, 0  ;;  %p130_p2 = scmp.eq.s32.totalorder %s885_s19, 3 }
   0x7   : > { %p135_p3 = scmp.ne.s32.totalorder %s1115_s16, %s1111_s15  ;;  %p136_p4 = scmp.eq.s32.totalorder %s886_s20, 3 }
   0x8   : > { %s1184_s24 = scalar_select %p117_p1, %s1119_s17, %s119_s22  }
   0x9   : > { %p1186_p5 = por %p130_p2, %p129_p0  ;;  %p1190_p6 = por %p136_p4, %p135_p3 }
   0xa   : > { %p889_p7 = scmp.ge.s32.totalorder %s1123_s18, 1  ;;  %p169_p8 = scmp.lt.s32.totalorder %s1123_s18, 5 }
   0xc   : > { %p170_p9 = pnand %p889_p7, %p169_p8 }
   0xd   : > { %s1199_s29 = sshll.u32 (!%p170_p9), %s885_s19, 5  ;;  %s197_s30 = sand.u32 (!%p170_p9), 1, %s1115_s16  }
   0xe   : > { %173 = sbr.rel (%p170_p9) target bundleno = 327 (0x147), region = 32  ;;  %p201_p10 = scmp.lt.s32.totalorder (!%p170_p9), %s1199_s29, 127 }
   0xf   : > { %s890_s5 = sshll.u32 (!%p170_p9), %s197_s30, 1  ;;  %s800_s10 = scalar_lea.hbm (!%p170_p9), %s1560_s4, %s1199_s29 }
  0x10   : > { %s785_s11 = scalar_lea.sflag (!%p170_p9), [#allocation3], %s197_s30  ;;  %s1125_s13 = smov (!%p170_p9), [#allocation2]  }
  0x11   : > { %s1067_s14 = sshll.u32 (!%p170_p9), %s1125_s13, 4  ;;  %s1068_s14 = int_to_ptr.vmem [resolvable:$false] %s1067_s14 }
  0x13   : > { %v1043_v0 = vld [vmem:[%s1557_s1 + $0x18] sm:$0xff]   ;;  %v1044_v1 = vld [vmem:[%s1557_s1 + $0x10] sm:$0xff]   ;;  %s1206_s6 = scalar_select %p201_p10, %s1199_s29, 127  ;;  %v1045_v2 = vld [vmem:[%s1557_s1 + $0x8] sm:$0xff]   ;;  %vm364_vm0 = vcmask 523264   ;;  %vm675_vm1 = vcmask 516096  }
  0x14   : > { %956 = vmatprep.subr.bf16.mxu0 %v1043_v0  ;;  %996 = vmatprep.subr.bf16.mxu1 %v1043_v0  ;;  %v1046_v4 = vld [vmem:[%s1557_s1] sm:$0xff]  }
  0x15   : > { %957 = vmatpush3.bf16.msra.mxu0 %v1043_v0  ;;  %1000 = vmatpush3.bf16.msra.mxu1 %v1043_v0  ;;  %s892_s9 = sshll.u32 %s1206_s6, 2  ;;  %s894_s19 = sshll.u32 %s1206_s6, 3  ;;  %v1256_v20 = vld [vmem:[%s1558_s2] ss:$0 sm:$0xff] }
  0x16   : > { %958 = vmatprep.subr.bf16.mxu0 %v1044_v1  ;;  %997 = vmatprep.subr.bf16.mxu1 %v1044_v1  ;;  %s1215_s12 = scalar_lea.vmem %s1556_s0, %s892_s9  ;;  %s1261_s28 = scalar_lea.vmem %s1559_s3, %s894_s19 }
  0x17   : > { %v1047_v3 = vld [vmem:[%s1215_s12] sm:$0xff]   ;;  %v1048_v5 = vld [vmem:[%s1215_s12 + $0x8] sm:$0xff]   ;;  %v1049_v6 = vld [vmem:[%s1215_s12 + $0x10] sm:$0xff]   ;;  %s199_s6 = scalar_lea.vmem [#allocation2], %s890_s5  ;;  %s1069_s19 = scalar_lea.vmem %s1068_s14, 64 }
  0x18   : > { %964 = vmatprep.mubr.msk.bf16.mxu0 %vm364_vm0, %v1047_v3  ;;  %v1055_v7 = vld [vmem:[%s1215_s12 + $0x40] sm:$0xff]   ;;  %v1056_v8 = vld [vmem:[%s1215_s12 + $0x48] sm:$0xff]   ;;  %v1057_v9 = vld [vmem:[%s1215_s12 + $0x50] sm:$0xff]   ;;  %s802_s7 = sshll.u32 %s199_s6, 4  ;;  %s803_s7 = int_to_ptr.vmem [resolvable:$true] %s802_s7 }
  0x19   : > { %959 = vmatpush3.bf16.msra.mxu0 %v1044_v1  ;;  %1001 = vmatpush3.bf16.msra.mxu1 %v1044_v1  ;;  %v1050_v10 = vld [vmem:[%s1215_s12 + $0x18] sm:$0xff]   ;;  %v1051_v12 = vld [vmem:[%s1215_s12 + $0x20] sm:$0xff]   ;;  %v1052_v14 = vld [vmem:[%s1215_s12 + $0x28] sm:$0xff]   ;;  %p1070_p0 = scmp.lt.s32.totalorder %s803_s7, %s1068_s14 }
  0x1a   : > { %960 = vmatprep.subr.bf16.mxu0 %v1045_v2  ;;  %998 = vmatprep.subr.bf16.mxu1 %v1045_v2  ;;  %v1058_v11 = vld [vmem:[%s1215_s12 + $0x58] sm:$0xff]   ;;  %v1059_v13 = vld [vmem:[%s1215_s12 + $0x60] sm:$0xff]   ;;  %v1060_v15 = vld [vmem:[%s1215_s12 + $0x68] sm:$0xff]  }
  0x1b   : > { %980 = vmatprep.mubr.msk.bf16.mxu1 %vm364_vm0, %v1055_v7  ;;  %v1053_v16 = vld [vmem:[%s1215_s12 + $0x30] sm:$0xff]   ;;  %v1054_v18 = vld [vmem:[%s1215_s12 + $0x38] sm:$0xff]  }
  0x1c   : > { %v1061_v17 = vld [vmem:[%s1215_s12 + $0x70] sm:$0xff]   ;;  %v1062_v19 = vld [vmem:[%s1215_s12 + $0x78] sm:$0xff]   ;;  %s1063_s12 = scalar_lea.vmem %s803_s7, 32 }
  0x1d   : > { %961 = vmatpush3.bf16.msra.mxu0 %v1045_v2  ;;  %1002 = vmatpush3.bf16.msra.mxu1 %v1045_v2  ;;  %p1064_p11 = scmp.ne.s32.totalorder %s803_s7, %s1063_s12  ;;  %p1071_p1 = scmp.lt.s32.totalorder %s1069_s19, %s1063_s12 }
  0x1e   : > { %962 = vmatprep.subr.bf16.mxu0 %v1046_v4  ;;  %999 = vmatprep.subr.bf16.mxu1 %v1046_v4 }
  0x1f   : > { %p1065_p12 = pnand %p1064_p11, %p1186_p5  ;;  %p1072_p2 = por %p1071_p1, %p1070_p0 }
  0x21   : > { %963 = vmatpush3.bf16.msra.mxu0 %v1046_v4  ;;  %1003 = vmatpush3.bf16.msra.mxu1 %v1046_v4  ;;  %p1066_p13 = pneg %p1065_p12 }
  0x23   : > { %p1073_p3 = pnand %p1072_p2, %p1066_p13 }
  0x24   : > { %965 = vmatmul.mubr.msk.bf16.vlgmr.msra.gmra.mxu0 %vm364_vm0, %v1048_v5  ;;  %981 = vmatmul.mubr.msk.bf16.vlgmr.msra.gmra.mxu1 %vm364_vm0, %v1056_v8 }
  0x25   : > { %968 = vmatprep.mubr.msk.bf16.mxu0 %vm364_vm0, %v1049_v6  ;;  %984 = vmatprep.mubr.msk.bf16.mxu1 %vm364_vm0, %v1057_v9 }
  0x2c   : > { %969 = vmatmul.mubr.msk.bf16.gmra.mxu0 %vm364_vm0, %v1050_v10  ;;  %985 = vmatmul.mubr.msk.bf16.gmra.mxu1 %vm364_vm0, %v1058_v11 }
  0x2d   : > { %972 = vmatprep.mubr.msk.bf16.mxu0 %vm364_vm0, %v1051_v12  ;;  %988 = vmatprep.mubr.msk.bf16.mxu1 %vm364_vm0, %v1059_v13 }
  0x34   : > { %973 = vmatmul.mubr.msk.bf16.gmra.mxu0 %vm364_vm0, %v1052_v14  ;;  %989 = vmatmul.mubr.msk.bf16.gmra.mxu1 %vm364_vm0, %v1060_v15 }
  0x35   : > { %976 = vmatprep.mubr.msk.bf16.mxu0 %vm364_vm0, %v1053_v16  ;;  %992 = vmatprep.mubr.msk.bf16.mxu1 %vm364_vm0, %v1061_v17 }
  0x3c   : > { %977 = vmatmul.mubr.msk.bf16.gmra.mxu0 %vm364_vm0, %v1054_v18  ;;  %993 = vmatmul.mubr.msk.bf16.gmra.mxu1 %vm364_vm0, %v1062_v19 }
  0xe4   : > { %v966_v21 = vpop.f32.mrf.mxu0  ;;  %v982_v22 = vpop.f32.mrf.mxu1 }
  0xe5   : > { %v456_v23 = vadd.f32 %v966_v21, %v1256_v20  ;;  %v1265_v24 = vadd.f32 %v982_v22, %v1256_v20 }
  0xe6   : > { %v447_v25 = vpop.f32.mrf.mxu0  ;;  %v511_v26 = vpop.f32.mrf.mxu1 }
  0xe7   : > { %576 = vst.msk [vmem:[%s1261_s28 + $0x10] sm:$0xff] %vm364_vm0, %v456_v23  ;;  %v448_v27 = vadd.f32 %v1256_v20, %v447_v25  ;;  %592 = vst.msk [vmem:[%s1261_s28 + $0x90] sm:$0xff] %vm364_vm0, %v1265_v24  ;;  %v1274_v29 = vadd.f32 %v1256_v20, %v511_v26  ;;  %v679_v37 = vmul.f32 %v456_v23, %v456_v23  ;;  %v609_v45 = vsel %vm364_vm0, %v456_v23, 0.0 }
  0xe8   : > { %v967_v28 = vpop.f32.mrf.mxu0  ;;  %v983_v30 = vpop.f32.mrf.mxu1 }
  0xe9   : > { %574 = vst.msk [vmem:[%s1261_s28] sm:$0xff] %vm364_vm0, %v448_v27  ;;  %v459_v31 = vadd.f32 %v967_v28, %v1256_v20  ;;  %590 = vst.msk [vmem:[%s1261_s28 + $0x80] sm:$0xff] %vm364_vm0, %v1274_v29  ;;  %v1283_v33 = vadd.f32 %v983_v30, %v1256_v20  ;;  %v677_v35 = vmul.f32 %v448_v27, %v448_v27  ;;  %v606_v41 = vsel %vm364_vm0, %v448_v27, 0.0 }
  0xea   : > { %v450_v32 = vpop.f32.mrf.mxu0  ;;  %v514_v34 = vpop.f32.mrf.mxu1  ;;  %v712_v58 = vsel %vm364_vm0, %v679_v37, 0.0 }
  0xeb   : > { %577 = vst.msk [vmem:[%s1261_s28 + $0x18] sm:$0xff] %vm364_vm0, %v459_v31  ;;  %v451_v36 = vadd.f32 %v1256_v20, %v450_v32  ;;  %593 = vst.msk [vmem:[%s1261_s28 + $0x98] sm:$0xff] %vm364_vm0, %v1283_v33  ;;  %v1292_v39 = vadd.f32 %v1256_v20, %v514_v34  ;;  %v709_v49 = vsel %vm364_vm0, %v677_v35, 0.0  ;;  %v680_v50 = vmul.f32 %v459_v31, %v459_v31 }
  0xec   : > { %v970_v38 = vpop.f32.mrf.mxu0  ;;  %v986_v40 = vpop.f32.mrf.mxu1  ;;  %v611_v59 = vsel %vm364_vm0, %v459_v31, 0.0 }
  0xed   : > { %575 = vst.msk [vmem:[%s1261_s28 + $0x8] sm:$0xff] %vm364_vm0, %v451_v36  ;;  %v607_v42 = vsel %vm364_vm0, %v451_v36, 0.0  ;;  %v678_v43 = vmul.f32 %v451_v36, %v451_v36  ;;  %v472_v44 = vadd.f32 %v970_v38, %v1256_v20  ;;  %591 = vst.msk [vmem:[%s1261_s28 + $0x88] sm:$0xff] %vm364_vm0, %v1292_v39  ;;  %v1309_v56 = vadd.f32 %v986_v40, %v1256_v20 }
  0xee   : > { %v608_v46 = vadd.f32 %v607_v42, %v606_v41  ;;  %v463_v47 = vpop.f32.mrf.mxu0  ;;  %v527_v48 = vpop.f32.mrf.mxu1  ;;  %v714_v2 = vsel %vm364_vm0, %v680_v50, 0.0 }
  0xef   : > { %v710_v51 = vsel %vm364_vm0, %v678_v43, 0.0  ;;  %580 = vst.msk [vmem:[%s1261_s28 + $0x30] sm:$0xff] %vm364_vm0, %v472_v44  ;;  %v464_v52 = vadd.f32 %v1256_v20, %v463_v47  ;;  %596 = vst.msk [vmem:[%s1261_s28 + $0xb0] sm:$0xff] %vm364_vm0, %v1309_v56  ;;  %v683_v5 = vmul.f32 %v472_v44, %v472_v44  ;;  %v1325_v9 = vadd.f32 %v1256_v20, %v527_v48 }
  0xf0   : > { %v610_v53 = vadd.f32 %v609_v45, %v608_v46  ;;  %v711_v54 = vadd.f32 %v710_v51, %v709_v49  ;;  %v971_v55 = vpop.f32.mrf.mxu0  ;;  %v987_v57 = vpop.f32.mrf.mxu1  ;;  %v617_v19 = vsel %vm364_vm0, %v472_v44, 0.0 }
  0xf1   : > { %578 = vst.msk [vmem:[%s1261_s28 + $0x20] sm:$0xff] %vm364_vm0, %v464_v52  ;;  %v681_v60 = vmul.f32 %v464_v52, %v464_v52  ;;  %v475_v61 = vadd.f32 %v971_v55, %v1256_v20  ;;  %v613_v3 = vsel %vm364_vm0, %v464_v52, 0.0  ;;  %594 = vst.msk [vmem:[%s1261_s28 + $0xa0] sm:$0xff] %vm364_vm0, %v1325_v9  ;;  %v1343_v28 = vadd.f32 %v987_v57, %v1256_v20 }
  0xf2   : > { %v713_v62 = vadd.f32 %v712_v58, %v711_v54  ;;  %v612_v63 = vadd.f32 %v611_v59, %v610_v53  ;;  %v466_v0 = vpop.f32.mrf.mxu0  ;;  %v530_v1 = vpop.f32.mrf.mxu1  ;;  %v720_v31 = vsel %vm364_vm0, %v683_v5, 0.0 }
  0xf3   : > { %581 = vst.msk [vmem:[%s1261_s28 + $0x38] sm:$0xff] %vm364_vm0, %v475_v61  ;;  %v467_v4 = vadd.f32 %v1256_v20, %v466_v0  ;;  %v716_v11 = vsel %vm364_vm0, %v681_v60, 0.0  ;;  %v684_v21 = vmul.f32 %v475_v61, %v475_v61  ;;  %v619_v32 = vsel %vm364_vm0, %v475_v61, 0.0  ;;  %597 = vst.msk [vmem:[%s1261_s28 + $0xb8] sm:$0xff] %vm364_vm0, %v1343_v28 }
  0xf4   : > { %v614_v6 = vadd.f32 %v613_v3, %v612_v63  ;;  %v715_v7 = vadd.f32 %v714_v2, %v713_v62  ;;  %v974_v8 = vpop.f32.mrf.mxu0  ;;  %v990_v10 = vpop.f32.mrf.mxu1  ;;  %v1359_v48 = vadd.f32 %v1256_v20, %v530_v1 }
  0xf5   : > { %579 = vst.msk [vmem:[%s1261_s28 + $0x28] sm:$0xff] %vm364_vm0, %v467_v4  ;;  %v615_v12 = vsel %vm364_vm0, %v467_v4, 0.0  ;;  %v682_v13 = vmul.f32 %v467_v4, %v467_v4  ;;  %v488_v14 = vadd.f32 %v974_v8, %v1256_v20  ;;  %v722_v41 = vsel %vm364_vm0, %v684_v21, 0.0 }
  0xf6   : > { %v717_v15 = vadd.f32 %v716_v11, %v715_v7  ;;  %v616_v16 = vadd.f32 %v615_v12, %v614_v6  ;;  %v479_v17 = vpop.f32.mrf.mxu0  ;;  %v1335_v18 = vpop.f32.mrf.mxu1  ;;  %595 = vst.msk [vmem:[%s1261_s28 + $0xa8] sm:$0xff] %vm364_vm0, %v1359_v48  ;;  %v1375_v1 = vadd.f32 %v990_v10, %v1256_v20 }
  0xf7   : > { %v718_v22 = vsel %vm364_vm0, %v682_v13, 0.0  ;;  %584 = vst.msk [vmem:[%s1261_s28 + $0x50] sm:$0xff] %vm364_vm0, %v488_v14  ;;  %v480_v23 = vadd.f32 %v1256_v20, %v479_v17  ;;  %v687_v44 = vmul.f32 %v488_v14, %v488_v14  ;;  %v625_v58 = vsel %vm364_vm0, %v488_v14, 0.0 }
  0xf8   : > { %v618_v25 = vadd.f32 %v617_v19, %v616_v16  ;;  %v719_v26 = vadd.f32 %v718_v22, %v717_v15  ;;  %v975_v27 = vpop.f32.mrf.mxu0  ;;  %v991_v30 = vpop.f32.mrf.mxu1  ;;  %600 = vst.msk [vmem:[%s1261_s28 + $0xd0] sm:$0xff] %vm364_vm0, %v1375_v1  ;;  %v1392_v17 = vadd.f32 %v1256_v20, %v1335_v18 }
  0xf9   : > { %582 = vst.msk [vmem:[%s1261_s28 + $0x40] sm:$0xff] %vm364_vm0, %v480_v23  ;;  %v685_v34 = vmul.f32 %v480_v23, %v480_v23  ;;  %v491_v35 = vadd.f32 %v975_v27, %v1256_v20  ;;  %v621_v42 = vsel %vm364_vm0, %v480_v23, 0.0  ;;  %v728_v2 = vsel %vm364_vm0, %v687_v44, 0.0 }
  0xfa   : > { %v721_v36 = vadd.f32 %v720_v31, %v719_v26  ;;  %v620_v37 = vadd.f32 %v619_v32, %v618_v25  ;;  %v482_v38 = vpop.f32.mrf.mxu0  ;;  %v546_v40 = vpop.f32.mrf.mxu1  ;;  %v1399_v23 = vadd.f32 %v991_v30, %v1256_v20  ;;  %598 = vst.msk [vmem:[%s1261_s28 + $0xc0] sm:$0xff] %vm364_vm0, %v1392_v17 }
  0xfb   : > { %585 = vst.msk [vmem:[%s1261_s28 + $0x58] sm:$0xff] %vm364_vm0, %v491_v35  ;;  %v483_v43 = vadd.f32 %v1256_v20, %v482_v38  ;;  %v724_v49 = vsel %vm364_vm0, %v685_v34, 0.0  ;;  %v688_v59 = vmul.f32 %v491_v35, %v491_v35  ;;  %v627_v3 = vsel %vm364_vm0, %v491_v35, 0.0 }
  0xfc   : > { %v622_v45 = vadd.f32 %v621_v42, %v620_v37  ;;  %v723_v46 = vadd.f32 %v722_v41, %v721_v36  ;;  %v978_v47 = vpop.f32.mrf.mxu0  ;;  %v994_v53 = vpop.f32.mrf.mxu1  ;;  %601 = vst.msk [vmem:[%s1261_s28 + $0xd8] sm:$0xff] %vm364_vm0, %v1399_v23  ;;  %v1410_v34 = vadd.f32 %v1256_v20, %v546_v40  ;;  %v693_v41 = vmul.f32 %v1274_v29, %v1274_v29 }
  0xfd   : > { %583 = vst.msk [vmem:[%s1261_s28 + $0x48] sm:$0xff] %vm364_vm0, %v483_v43  ;;  %v623_v50 = vsel %vm364_vm0, %v483_v43, 0.0  ;;  %v686_v51 = vmul.f32 %v483_v43, %v483_v43  ;;  %v504_v52 = vadd.f32 %v978_v47, %v1256_v20  ;;  %v730_v10 = vsel %vm364_vm0, %v688_v59, 0.0 }
  0xfe   : > { %v725_v54 = vadd.f32 %v724_v49, %v723_v46  ;;  %v624_v55 = vadd.f32 %v623_v50, %v622_v45  ;;  %v495_v57 = vpop.f32.mrf.mxu0  ;;  %v559_v6 = vpop.f32.mrf.mxu1  ;;  %v1413_v36 = vadd.f32 %v994_v53, %v1256_v20  ;;  %599 = vst.msk [vmem:[%s1261_s28 + $0xc8] sm:$0xff] %vm364_vm0, %v1410_v34  ;;  %v637_v46 = vsel %vm364_vm0, %v1274_v29, 0.0 }
  0xff   : > { %v726_v60 = vsel %vm364_vm0, %v686_v51, 0.0  ;;  %588 = vst.msk [vmem:[%s1261_s28 + $0x70] sm:$0xff] %vm364_vm0, %v504_v52  ;;  %v496_v61 = vadd.f32 %v1256_v20, %v495_v57  ;;  %v691_v14 = vmul.f32 %v504_v52, %v504_v52  ;;  %v633_v18 = vsel %vm364_vm0, %v504_v52, 0.0 }
 0x100   : > { %v626_v62 = vadd.f32 %v625_v58, %v624_v55  ;;  %v727_v63 = vadd.f32 %v726_v60, %v725_v54  ;;  %v979_v0 = vpop.f32.mrf.mxu0  ;;  %v995_v25 = vpop.f32.mrf.mxu1  ;;  %v1423_v42 = vadd.f32 %v1256_v20, %v559_v6  ;;  %604 = vst.msk [vmem:[%s1261_s28 + $0xf0] sm:$0xff] %vm364_vm0, %v1413_v36  ;;  %v694_v47 = vmul.f32 %v1292_v39, %v1292_v39 }
 0x101   : > { %586 = vst.msk [vmem:[%s1261_s28 + $0x60] sm:$0xff] %vm364_vm0, %v496_v61  ;;  %v689_v4 = vmul.f32 %v496_v61, %v496_v61  ;;  %v507_v5 = vadd.f32 %v979_v0, %v1256_v20  ;;  %v629_v12 = vsel %vm364_vm0, %v496_v61, 0.0  ;;  %v736_v37 = vsel %vm364_vm0, %v691_v14, 0.0 }
 0x102   : > { %v729_v7 = vadd.f32 %v728_v2, %v727_v63  ;;  %v628_v8 = vadd.f32 %v627_v3, %v626_v62  ;;  %v498_v11 = vpop.f32.mrf.mxu0  ;;  %v562_v40 = vpop.f32.mrf.mxu1  ;;  %602 = vst.msk [vmem:[%s1261_s28 + $0xe0] sm:$0xff] %vm364_vm0, %v1423_v42  ;;  %v1437_v49 = vadd.f32 %v995_v25, %v1256_v20  ;;  %v695_v53 = vmul.f32 %v1265_v24, %v1265_v24 }
 0x103   : > { %589 = vst.msk [vmem:[%s1261_s28 + $0x78] sm:$0xff] %vm364_vm0, %v507_v5  ;;  %v499_v13 = vadd.f32 %v1256_v20, %v498_v11  ;;  %v732_v19 = vsel %vm364_vm0, %v689_v4, 0.0  ;;  %v692_v31 = vmul.f32 %v507_v5, %v507_v5  ;;  %v635_v38 = vsel %vm364_vm0, %v507_v5, 0.0 }
 0x104   : > { %v630_v15 = vadd.f32 %v629_v12, %v628_v8  ;;  %v731_v16 = vadd.f32 %v730_v10, %v729_v7  ;;  %v1440_v52 = vadd.f32 %v1256_v20, %v562_v40  ;;  %v740_v54 = vsel %vm364_vm0, %v693_v41, 0.0  ;;  %605 = vst.msk [vmem:[%s1261_s28 + $0xf8] sm:$0xff] %vm364_vm0, %v1437_v49 }
 0x105   : > { %587 = vst.msk [vmem:[%s1261_s28 + $0x68] sm:$0xff] %vm364_vm0, %v499_v13  ;;  %v631_v21 = vsel %vm364_vm0, %v499_v13, 0.0  ;;  %v690_v22 = vmul.f32 %v499_v13, %v499_v13  ;;  %v738_v45 = vsel %vm364_vm0, %v692_v31, 0.0  ;;  %v639_v29 = vsel %vm364_vm0, %v1292_v39, 0.0 }
 0x106   : > { %v733_v26 = vadd.f32 %v732_v19, %v731_v16  ;;  %v632_v27 = vadd.f32 %v631_v21, %v630_v15  ;;  %603 = vst.msk [vmem:[%s1261_s28 + $0xe8] sm:$0xff] %vm364_vm0, %v1440_v52  ;;  %v641_v20 = vsel %vm364_vm0, %v1265_v24, 0.0  ;;  %v696_v58 = vmul.f32 %v1283_v33, %v1283_v33 }
 0x107   : > { %v734_v32 = vsel %vm364_vm0, %v690_v22, 0.0  ;;  %v742_v59 = vsel %vm364_vm0, %v694_v47, 0.0  ;;  %v744_v39 = vsel %vm364_vm0, %v695_v53, 0.0  ;;  %v643_v62 = vsel %vm364_vm0, %v1283_v33, 0.0 }
 0x108   : > { %v634_v30 = vadd.f32 %v633_v18, %v632_v27  ;;  %v735_v35 = vadd.f32 %v734_v32, %v733_v26  ;;  %v697_v63 = vmul.f32 %v1325_v9, %v1325_v9  ;;  %v746_v3 = vsel %vm364_vm0, %v696_v58, 0.0 }
 0x109   : > { %v645_v24 = vsel %vm364_vm0, %v1325_v9, 0.0  ;;  %v698_v4 = vmul.f32 %v1359_v48, %v1359_v48  ;;  %v699_v7 = vmul.f32 %v1309_v56, %v1309_v56  ;;  %v647_v8 = vsel %vm364_vm0, %v1359_v48, 0.0 }
 0x10a   : > { %v737_v43 = vadd.f32 %v736_v37, %v735_v35  ;;  %v636_v44 = vadd.f32 %v635_v38, %v634_v30  ;;  %v748_v33 = vsel %vm364_vm0, %v697_v63, 0.0  ;;  %v649_v12 = vsel %vm364_vm0, %v1309_v56, 0.0 }
 0x10b   : > { %v700_v9 = vmul.f32 %v1343_v28, %v1343_v28  ;;  %v750_v13 = vsel %vm364_vm0, %v698_v4, 0.0  ;;  %v752_v16 = vsel %vm364_vm0, %v699_v7, 0.0  ;;  %v651_v19 = vsel %vm364_vm0, %v1343_v28, 0.0 }
 0x10c   : > { %v638_v50 = vadd.f32 %v637_v46, %v636_v44  ;;  %v739_v51 = vadd.f32 %v738_v45, %v737_v43  ;;  %v701_v48 = vmul.f32 %v1392_v17, %v1392_v17  ;;  %v653_v56 = vsel %vm364_vm0, %v1392_v17, 0.0 }
 0x10d   : > { %v754_v25 = vsel %vm364_vm0, %v700_v9, 0.0  ;;  %v702_v26 = vmul.f32 %v1410_v34, %v1410_v34  ;;  %v703_v31 = vmul.f32 %v1375_v1, %v1375_v1  ;;  %v655_v32 = vsel %vm364_vm0, %v1410_v34, 0.0 }
 0x10e   : > { %v640_v55 = vadd.f32 %v639_v29, %v638_v50  ;;  %v741_v57 = vadd.f32 %v740_v54, %v739_v51  ;;  %v756_v28 = vsel %vm364_vm0, %v701_v48, 0.0  ;;  %v657_v37 = vsel %vm364_vm0, %v1375_v1, 0.0 }
 0x10f   : > { %v704_v17 = vmul.f32 %v1399_v23, %v1399_v23  ;;  %v758_v38 = vsel %vm364_vm0, %v702_v26, 0.0  ;;  %v760_v43 = vsel %vm364_vm0, %v703_v31, 0.0  ;;  %v659_v44 = vsel %vm364_vm0, %v1399_v23, 0.0 }
 0x110   : > { %v642_v60 = vadd.f32 %v641_v20, %v640_v55  ;;  %v743_v61 = vadd.f32 %v742_v59, %v741_v57  ;;  %v705_v34 = vmul.f32 %v1423_v42, %v1423_v42  ;;  %v661_v1 = vsel %vm364_vm0, %v1423_v42, 0.0 }
 0x111   : > { %v762_v47 = vsel %vm364_vm0, %v704_v17, 0.0  ;;  %v706_v50 = vmul.f32 %v1440_v52, %v1440_v52  ;;  %v707_v54 = vmul.f32 %v1413_v36, %v1413_v36  ;;  %v663_v29 = vsel %vm364_vm0, %v1440_v52, 0.0 }
 0x112   : > { %v745_v0 = vadd.f32 %v744_v39, %v743_v61  ;;  %v644_v2 = vadd.f32 %v643_v62, %v642_v60  ;;  %v764_v23 = vsel %vm364_vm0, %v705_v34, 0.0  ;;  %v665_v20 = vsel %vm364_vm0, %v1413_v36, 0.0 }
 0x113   : > { %v708_v42 = vmul.f32 %v1437_v49, %v1437_v49  ;;  %v766_v58 = vsel %vm364_vm0, %v706_v50, 0.0  ;;  %v768_v61 = vsel %vm364_vm0, %v707_v54, 0.0  ;;  %v667_v39 = vsel %vm364_vm0, %v1437_v49, 0.0 }
 0x114   : > { %v646_v5 = vadd.f32 %v645_v24, %v644_v2  ;;  %v747_v6 = vadd.f32 %v746_v3, %v745_v0 }
 0x115   : > { %v770_v52 = vsel %vm364_vm0, %v708_v42, 0.0 }
 0x116   : > { %v749_v11 = vadd.f32 %v748_v33, %v747_v6  ;;  %v648_v10 = vadd.f32 %v647_v8, %v646_v5 }
 0x118   : > { %v650_v14 = vadd.f32 %v649_v12, %v648_v10  ;;  %v751_v15 = vadd.f32 %v750_v13, %v749_v11 }
 0x11a   : > { %v753_v21 = vadd.f32 %v752_v16, %v751_v15  ;;  %v652_v22 = vadd.f32 %v651_v19, %v650_v14 }
 0x11c   : > { %v654_v27 = vadd.f32 %v653_v56, %v652_v22  ;;  %v755_v18 = vadd.f32 %v754_v25, %v753_v21 }
 0x11e   : > { %v757_v30 = vadd.f32 %v756_v28, %v755_v18  ;;  %v656_v35 = vadd.f32 %v655_v32, %v654_v27 }
 0x120   : > { %v658_v41 = vadd.f32 %v657_v37, %v656_v35  ;;  %v759_v40 = vadd.f32 %v758_v38, %v757_v30 }
 0x122   : > { %v761_v45 = vadd.f32 %v760_v43, %v759_v40  ;;  %v660_v46 = vadd.f32 %v659_v44, %v658_v41 }
 0x124   : > { %v662_v51 = vadd.f32 %v661_v1, %v660_v46  ;;  %v763_v53 = vadd.f32 %v762_v47, %v761_v45 }
 0x126   : > { %v765_v55 = vadd.f32 %v764_v23, %v763_v53  ;;  %v664_v57 = vadd.f32 %v663_v29, %v662_v51 }
 0x128   : > { %v666_v59 = vadd.f32 %v665_v20, %v664_v57  ;;  %v767_v60 = vadd.f32 %v766_v58, %v765_v55 }
 0x12a   : > { %v668_v62 = vadd.f32 %v667_v39, %v666_v59  ;;  %v769_v63 = vadd.f32 %v768_v61, %v767_v60 }
 0x12c   : > { %v669_v0 = vrot.slane %v668_v62, 4  ;;  %v771_v2 = vadd.f32 %v770_v52, %v769_v63 }
 0x12e   : > { %v670_v36 = vadd.f32 %v669_v0, %v668_v62  ;;  %v772_v3 = vrot.slane %v771_v2, 4 }
 0x130   : > { %v671_v24 = vrot.slane %v670_v36, 2  ;;  %v773_v4 = vadd.f32 %v772_v3, %v771_v2 }
 0x132   : > { %v672_v5 = vadd.f32 %v671_v24, %v670_v36  ;;  %v774_v6 = vrot.slane %v773_v4, 2 }
 0x134   : > { %v673_v7 = vrot.slane %v672_v5, 1  ;;  %v775_v33 = vadd.f32 %v774_v6, %v773_v4 }
 0x136   : > { %v674_v49 = vadd.f32 %v673_v7, %v672_v5  ;;  %v776_v8 = vrot.slane %v775_v33, 1 }
 0x138   : > { %676 = vst.msk [vmem:[%s199_s6] sm:$0x1] %vm675_vm1, %v674_v49  ;;  %v777_v11 = vadd.f32 %v776_v8, %v775_v33 }
 0x13a   : > { %778 = vst.msk [vmem:[%s199_s6 + $0x1] sm:$0x1] %vm675_vm1, %v777_v11 }
 0x13b   : > { %1076 = shalt.err (!%p1073_p3)
}
 0x13c   : > { %s1077_s20 = scalar_lea.hbm %s800_s10, 32  ;;  %s1081_s23 = scalar_lea.hbm %s1560_s4, 128 }
 0x13d   : > { %p1078_p4 = scmp.ne.s32.totalorder %s800_s10, %s1077_s20  ;;  %p1082_p9 = scmp.lt.s32.totalorder %s800_s10, %s1560_s4 }
 0x13e   : > { %p1083_p10 = scmp.lt.s32.totalorder %s1081_s23, %s1077_s20 }
 0x13f   : > { %p1079_p7 = pnand %p1078_p4, %p1186_p5 }
 0x140   : > { %p1084_p11 = por %p1083_p10, %p1082_p9 }
 0x141   : > { %p1080_p8 = pneg %p1079_p7 }
 0x143   : > { %p1085_p12 = pnand %p1084_p11, %p1080_p8 }
 0x145   : > { %1088 = shalt.err (!%p1085_p12)
}
 0x146   : > { %1004 = dma.vmem_to_hbm [thread:$0]  (%p1186_p5), %s803_s7, 32, %s800_s10, %s785_s11  }
 0x147 PF: > { %p1010_p13 = scmp.ge.s32.totalorder %s1123_s18, 2  ;;  %s822_s30 = sand.u32 1, %s1111_s15  }
 0x148   : > { %s823_s5 = scalar_lea.sflag [#allocation3], %s822_s30 }
 0x149   : > { %p1007_p0 = pnand %p1010_p13, %p1190_p6 }
 0x14b   : > { %p1008_p1 = pneg %p1007_p0 }
 0x14d   : > { %1106 = dma.done.wait (%p1008_p1), %s823_s5, 32  }
 0x14e   : > { %1108 = vsyncadd (%p1008_p1), %s823_s5, 4294967264  ;;  %p15_p2 = scmp.ge.s32.totalorder %s1174_s21, 6   ;;  %s1563_s15 = smov %s1115_s16 }
 0x14f   : > { %s1564_s16 = smov %s1119_s17  ;;  %s1565_s17 = smov %s1184_s24 }
 0x150   : > { %s1566_s18 = smov %s1174_s21  ;;  %17 = sbr.rel (!%p15_p2) target bundleno = 3 (0x3), region = 79 }
 0x155   :  { %828 = vsyncpa [#allocation3], 1 }
 0x156   :  { %830 = vsyncpa [#allocation3 + $0x1], 1 }

</bundles_post_ra>
